<compile_context>
chip_gen: v6e
topology: v6e:2x2x1
jax: 0.10.0
libtpu: 0.0.40
codegen_flags: <defaults>
</compile_context>

<pallas_src>
import jax
import jax.numpy as jnp
from jax.experimental import pallas as pl
from jax.experimental.pallas import tpu as pltpu

_LANES = 128


def _round_up(x, m):
    return ((x + m - 1) // m) * m


def _cdiv(a, b):
    return -(-a // b)


def _vmem_limit_bytes():
    # v5e/v6e: 128 MiB VMEM per core; v7x: 64 MiB.  Leave headroom for
    # Mosaic internal scratch + the double-buffered x tile.
    try:
        cap = int(pltpu.get_tpu_info().vmem_capacity_bytes)
    except Exception:
        cap = 64 * 1024 * 1024
    return int(min(100 * 2**20, max(cap - 16 * 2**20, 32 * 2**20)))


# ---------------------------------------------------------------------------
# Batch-tiled MLP kernel: one tile of TB rows per grid step.
# ---------------------------------------------------------------------------
def _mlp_kernel(x_ref, w1t_ref, eff_b1_ref, w2_ref, b2_ref, w3r_ref, b3_ref,
                o_ref):
    x = x_ref[...].astype(jnp.float32)                          # (TB, D)

    # Layer 1: cat([x, mean]) @ W1 + b1  ==  x @ W1[:D] + eff_b1 ; ReLU
    h = jnp.dot(x, w1t_ref[...].astype(jnp.float32),
                preferred_element_type=jnp.float32)
    h = jnp.maximum(h + eff_b1_ref[...], 0.0)                   # (TB, H1p)

    # Layer 2: Linear(H1 -> H2) ; ReLU
    h = jnp.dot(h, w2_ref[...].astype(jnp.float32),
                preferred_element_type=jnp.float32)
    h = jnp.maximum(h + b2_ref[...].astype(jnp.float32), 0.0)   # (TB, H2p)

    # Layer 3: Linear(H2 -> 1) ; Sigmoid.  Degenerate N=1 output -> VPU
    # multiply + lane reduce; b3 is read as a scalar out of SMEM.
    logit = (jnp.sum(h * w3r_ref[...].astype(jnp.float32),
                     axis=-1, keepdims=True)
             + b3_ref[0, 0])                                    # (TB, 1)
    o_ref[...] = jax.nn.sigmoid(logit).astype(o_ref.dtype)      # 4 B/row


def discriminator_forward(x, params, *, block_rows=1024):
    """x: (B, data_dim). params: (w1, b1, w2, b2, w3, b3) with w_i of shape
    (in, out) (transpose of PyTorch's (out, in)) and b_i of shape (1, out).
    Assumes the medGAN Discriminator layout hidden_dim = (H1, H2, 1)."""
    w1, b1, w2, b2, w3, b3 = params
    B, D = x.shape
    H1 = w1.shape[1]
    H2 = w2.shape[1]
    assert w1.shape[0] == 2 * D and w3.shape == (H2, 1)

    # ---- fold the batch mean into an effective first-layer bias (XLA) -----
    # eff_b1 = mean(x) @ w1[D:] + b1  : a column reduce + tiny GEMV that XLA
    # handles at full HBM bandwidth; only w1[:D] ever reaches the kernel.
    w1_top, w1_bot = w1[:D], w1[D:]
    mean = jnp.mean(x.astype(jnp.float32), axis=0, keepdims=True)         # (1, D)
    eff_b1 = mean @ w1_bot.astype(jnp.float32) + b1.astype(jnp.float32)   # (1, H1)

    # ---- zero-pad hidden dims to lane-dense multiples of 128 (exact) ------
    h1p = _round_up(H1, _LANES)
    h2p = _round_up(H2, _LANES)
    w1_top_p = jnp.pad(w1_top, ((0, 0), (0, h1p - H1)))
    eff_b1_p = jnp.pad(eff_b1, ((0, 0), (0, h1p - H1)))
    w2_p = jnp.pad(w2, ((0, h1p - H1), (0, h2p - H2)))
    b2_p = jnp.pad(b2, ((0, 0), (0, h2p - H2)))
    w3_row_p = jnp.pad(w3.reshape(1, H2), ((0, 0), (0, h2p - H2)))
    b3_s = b3.reshape(1, 1)

    # ---- batch tiling: aim for >= 2 tiles (v7x 2 TCs / megacore) ----------
    # block_rows=1024 amortizes the ~0.35us/step pipeline overhead on
    # v5e/v6e (128 MiB VMEM); the per-tile footprint here is just the x tile
    # so it also fits comfortably inside v7x's 64 MiB VMEM.
    if B > 8:
        tb = max(8, min(block_rows, _round_up(_cdiv(B, 2), 8)))
    else:
        tb = 8
    num_tiles = _cdiv(B, tb)   # ragged tail rows are masked by Pallas

    const = lambda i: (0, 0)   # VMEM-resident block (DMA'd once)

    itemsize = x.dtype.itemsize
    param_bytes = sum(int(a.size) * a.dtype.itemsize
                      for a in (w1_top_p, eff_b1_p, w2_p, b2_p, w3_row_p, b3_s))
    cost = pl.CostEstimate(
        flops=int(2 * B * (D * h1p + h1p * h2p + h2p)),
        transcendentals=int(B),
        bytes_accessed=int(B * D * itemsize + param_bytes + B * itemsize))

    out = pl.pallas_call(
        _mlp_kernel,
        out_shape=jax.ShapeDtypeStruct((B, 1), x.dtype),
        grid=(num_tiles,),
        in_specs=[
            pl.BlockSpec((tb, D), lambda i: (i, 0)),     # x tile
            pl.BlockSpec((D, h1p), const),               # w1[:D], padded
            pl.BlockSpec((1, h1p), const),               # eff_b1
            pl.BlockSpec((h1p, h2p), const),             # w2
            pl.BlockSpec((1, h2p), const),               # b2
            pl.BlockSpec((1, h2p), const),               # w3 as a row
            pl.BlockSpec(memory_space=pltpu.MemorySpace.SMEM),  # b3 scalar
        ],
        out_specs=pl.BlockSpec((tb, 1), lambda i: (i, 0)),
        compiler_params=pltpu.CompilerParams(
            dimension_semantics=("parallel",),           # megacore / 2-TC
            vmem_limit_bytes=_vmem_limit_bytes()),
        cost_estimate=cost,
    )(x, w1_top_p, eff_b1_p, w2_p, b2_p, w3_row_p, b3_s)

    return out


def init_params(key, data_dim, hidden_dim):
    """Deterministic init mimicking torch.nn.Linear default U(-1/sqrt(fan_in), +)."""
    dims = [2 * data_dim] + list(hidden_dim)
    params = []
    for i in range(len(hidden_dim)):
        fan_in, fan_out = dims[i], dims[i + 1]
        key, kw, kb = jax.random.split(key, 3)
        bound = 1.0 / jnp.sqrt(jnp.float32(fan_in))
        w = jax.random.uniform(kw, (fan_in, fan_out), jnp.float32, -bound, bound)
        b = jax.random.uniform(kb, (1, fan_out), jnp.float32, -bound, bound)
        params += [w, b]
    return tuple(params)


def reference_forward(x, params):
    """Pure-JAX reference matching the PyTorch module exactly."""
    w1, b1, w2, b2, w3, b3 = params
    mean = jnp.mean(x, axis=0, keepdims=True)
    mean = jnp.broadcast_to(mean, x.shape)
    inp = jnp.concatenate([x, mean], axis=1)
    h = jnp.maximum(inp @ w1 + b1, 0.0)     # hidden > 1 -> ReLU
    h = jnp.maximum(h @ w2 + b2, 0.0)       # hidden > 1 -> ReLU
    return jax.nn.sigmoid(h @ w3 + b3)      # out dim 1 -> Sigmoid


if __name__ == "__main__":
    # Small shapes consistent with the module: batch=8, data_dim=16,
    # hidden_dim=(32, 16, 1)  (last layer 1 -> Sigmoid, others ReLU).
    batch, data_dim = 8, 16
    hidden_dim = (32, 16, 1)

    key = jax.random.PRNGKey(0)
    key, kx = jax.random.split(key)
    x = jax.random.normal(kx, (batch, data_dim), jnp.float32)

    params = init_params(key, data_dim, hidden_dim)

    out = discriminator_forward(x, params)
    out = jax.block_until_ready(out)

    ref = reference_forward(x, params)
    assert out.shape == (batch, 1), out.shape
    assert jnp.allclose(out, ref, atol=1e-5, rtol=1e-5), (
        f"mismatch: max abs diff {jnp.max(jnp.abs(out - ref))}")

    print("KERNEL_OK")
</pallas_src>

<mosaic_0001>
module attributes {stable_mosaic.version = 11 : i64} {
  func.func @_mlp_kernel(%arg0: i32, %arg1: memref<8x16xf32, #tpu.memory_space<vmem>>, %arg2: memref<16x128xf32, #tpu.memory_space<vmem>>, %arg3: memref<1x128xf32, #tpu.memory_space<vmem>>, %arg4: memref<128x128xf32, #tpu.memory_space<vmem>>, %arg5: memref<1x128xf32, #tpu.memory_space<vmem>>, %arg6: memref<1x128xf32, #tpu.memory_space<vmem>>, %arg7: memref<1x1xf32, #tpu.memory_space<smem>>, %arg8: memref<8x1xf32, #tpu.memory_space<vmem>>) attributes {dimension_semantics = [#tpu.dimension_semantics<parallel>], iteration_bounds = array<i64: 1>, scalar_prefetch = 0 : i64, scratch_operands = 0 : i64, tpu.core_type = #tpu.core_type<tc>, window_params = [{transform_indices = @transform_0, window_bounds = array<i64: 8, 16>}, {pipeline_mode = #tpu.pipeline_mode<synchronous>, transform_indices = @transform_1, window_bounds = array<i64: 16, 128>}, {pipeline_mode = #tpu.pipeline_mode<synchronous>, transform_indices = @transform_2, window_bounds = array<i64: 1, 128>}, {pipeline_mode = #tpu.pipeline_mode<synchronous>, transform_indices = @transform_3, window_bounds = array<i64: 128, 128>}, {pipeline_mode = #tpu.pipeline_mode<synchronous>, transform_indices = @transform_4, window_bounds = array<i64: 1, 128>}, {pipeline_mode = #tpu.pipeline_mode<synchronous>, transform_indices = @transform_5, window_bounds = array<i64: 1, 128>}, {transform_indices = @transform_6, window_bounds = array<i64: 1, 1>}, {transform_indices = @transform_7, window_bounds = array<i64: 8, 1>}]} {
    %c0 = arith.constant 0 : index
    %c0_0 = arith.constant 0 : index
    %0 = vector.load %arg1[%c0, %c0_0] : memref<8x16xf32, #tpu.memory_space<vmem>>, vector<8x16xf32>
    %c0_1 = arith.constant 0 : index
    %c0_2 = arith.constant 0 : index
    %1 = vector.load %arg2[%c0_1, %c0_2] : memref<16x128xf32, #tpu.memory_space<vmem>>, vector<16x128xf32>
    %cst = arith.constant dense<0.000000e+00> : vector<8x128xf32>
    %2 = tpu.matmul %0, %1, %cst {dimension_numbers = #tpu.dot_dimension_numbers<[1], [0], [0], [1], [0, 0, 1, 1], [], []>} : vector<8x16xf32>, vector<16x128xf32>, vector<8x128xf32> -> vector<8x128xf32>
    %c0_3 = arith.constant 0 : index
    %c0_4 = arith.constant 0 : index
    %3 = vector.load %arg3[%c0_3, %c0_4] : memref<1x128xf32, #tpu.memory_space<vmem>>, vector<1x128xf32>
    %4 = vector.broadcast %3 : vector<1x128xf32> to vector<8x128xf32>
    %5 = arith.addf %2, %4 : vector<8x128xf32>
    %cst_5 = arith.constant 0.000000e+00 : f32
    %6 = vector.broadcast %cst_5 : f32 to vector<8x128xf32>
    %7 = arith.maximumf %5, %6 : vector<8x128xf32>
    %c0_6 = arith.constant 0 : index
    %c0_7 = arith.constant 0 : index
    %8 = vector.load %arg4[%c0_6, %c0_7] : memref<128x128xf32, #tpu.memory_space<vmem>>, vector<128x128xf32>
    %cst_8 = arith.constant dense<0.000000e+00> : vector<8x128xf32>
    %9 = tpu.matmul %7, %8, %cst_8 {dimension_numbers = #tpu.dot_dimension_numbers<[1], [0], [0], [1], [0, 0, 1, 1], [], []>} : vector<8x128xf32>, vector<128x128xf32>, vector<8x128xf32> -> vector<8x128xf32>
    %c0_9 = arith.constant 0 : index
    %c0_10 = arith.constant 0 : index
    %10 = vector.load %arg5[%c0_9, %c0_10] : memref<1x128xf32, #tpu.memory_space<vmem>>, vector<1x128xf32>
    %11 = vector.broadcast %10 : vector<1x128xf32> to vector<8x128xf32>
    %12 = arith.addf %9, %11 : vector<8x128xf32>
    %cst_11 = arith.constant 0.000000e+00 : f32
    %13 = vector.broadcast %cst_11 : f32 to vector<8x128xf32>
    %14 = arith.maximumf %12, %13 : vector<8x128xf32>
    %c0_12 = arith.constant 0 : index
    %c0_13 = arith.constant 0 : index
    %15 = vector.load %arg6[%c0_12, %c0_13] : memref<1x128xf32, #tpu.memory_space<vmem>>, vector<1x128xf32>
    %16 = vector.broadcast %15 : vector<1x128xf32> to vector<8x128xf32>
    %17 = arith.mulf %14, %16 : vector<8x128xf32>
    %cst_14 = arith.constant dense<0.000000e+00> : vector<8xf32>
    %18 = vector.multi_reduction <add>, %17, %cst_14 [1] : vector<8x128xf32> to vector<8xf32>
    %19 = vector.shape_cast %18 : vector<8xf32> to vector<8x1xf32>
    %c0_15 = arith.constant 0 : index
    %c0_16 = arith.constant 0 : index
    %20 = memref.load %arg7[%c0_15, %c0_16] : memref<1x1xf32, #tpu.memory_space<smem>>
    %21 = vector.broadcast %20 : f32 to vector<8x1xf32>
    %22 = arith.addf %19, %21 : vector<8x1xf32>
    %23 = arith.negf %22 : vector<8x1xf32>
    %24 = math.exp %23 : vector<8x1xf32>
    %cst_17 = arith.constant 1.000000e+00 : f32
    %25 = vector.broadcast %cst_17 : f32 to vector<8x1xf32>
    %26 = arith.addf %25, %24 : vector<8x1xf32>
    %27 = arith.divf %25, %26 : vector<8x1xf32>
    %c0_18 = arith.constant 0 : index
    %c0_19 = arith.constant 0 : index
    %28 = vector.load %arg8[%c0_18, %c0_19] : memref<8x1xf32, #tpu.memory_space<vmem>>, vector<8x1xf32>
    tpu.vector_store %arg8[%c0_18, %c0_19], %27 {strides = array<i32>} : memref<8x1xf32, #tpu.memory_space<vmem>>, vector<8x1xf32>,
    return
  }
  func.func @transform_0(%arg0: i32) -> (i32, i32) {
    %c0_i32 = arith.constant 0 : i32
    %c0_i32_0 = arith.constant 0 : i32
    return %arg0, %c0_i32 : i32, i32
  }
  func.func @transform_1(%arg0: i32) -> (i32, i32) {
    %c0_i32 = arith.constant 0 : i32
    %c0_i32_0 = arith.constant 0 : i32
    %c0_i32_1 = arith.constant 0 : i32
    return %c0_i32, %c0_i32_0 : i32, i32
  }
  func.func @transform_2(%arg0: i32) -> (i32, i32) {
    %c0_i32 = arith.constant 0 : i32
    %c0_i32_0 = arith.constant 0 : i32
    %c0_i32_1 = arith.constant 0 : i32
    return %c0_i32, %c0_i32_0 : i32, i32
  }
  func.func @transform_3(%arg0: i32) -> (i32, i32) {
    %c0_i32 = arith.constant 0 : i32
    %c0_i32_0 = arith.constant 0 : i32
    %c0_i32_1 = arith.constant 0 : i32
    return %c0_i32, %c0_i32_0 : i32, i32
  }
  func.func @transform_4(%arg0: i32) -> (i32, i32) {
    %c0_i32 = arith.constant 0 : i32
    %c0_i32_0 = arith.constant 0 : i32
    %c0_i32_1 = arith.constant 0 : i32
    return %c0_i32, %c0_i32_0 : i32, i32
  }
  func.func @transform_5(%arg0: i32) -> (i32, i32) {
    %c0_i32 = arith.constant 0 : i32
    %c0_i32_0 = arith.constant 0 : i32
    %c0_i32_1 = arith.constant 0 : i32
    return %c0_i32, %c0_i32_0 : i32, i32
  }
  func.func @transform_6(%arg0: i32) -> (i32, i32) {
    %c0_i32 = arith.constant 0 : i32
    %c0_i32_0 = arith.constant 0 : i32
    %c0_i32_1 = arith.constant 0 : i32
    return %c0_i32, %c0_i32_0 : i32, i32
  }
  func.func @transform_7(%arg0: i32) -> (i32, i32) {
    %c0_i32 = arith.constant 0 : i32
    %c0_i32_0 = arith.constant 0 : i32
    return %arg0, %c0_i32 : i32, i32
  }
}

</mosaic_0001>

<bundles_post_ra>
// kernel: tpu_custom_call.1
= control target key start
LH: loop header
LB: loop body
LE: loop exit
PB: predicated region body
PF: predicated region fallthrough
CT: control target
= control target key end

     0   :  { %13 = vsyncpa [#allocation4], 0  ;;  %s485_s0 = inlined_call_operand.hbm [shape: f32[8,16], index: 0, kind: input, shape index: {}]   ;;  %s486_s1 = inlined_call_operand.hbm [shape: f32[16,128], index: 1, kind: input, shape index: {}]   ;;  %s487_s2 = inlined_call_operand.vmem [shape: f32[1,128], index: 2, kind: input, shape index: {}]   ;;  %s488_s3 = inlined_call_operand.hbm [shape: f32[128,128], index: 3, kind: input, shape index: {}]   ;;  %s489_s4 = inlined_call_operand.vmem [shape: f32[1,128], index: 4, kind: input, shape index: {}]   ;;  %s490_s5 = inlined_call_operand.vmem [shape: f32[1,128], index: 5, kind: input, shape index: {}]   ;;  %s491_s6 = inlined_call_operand.<no memory space> [shape: f32[1,1], index: 6, kind: input, shape index: {}]   ;;  %s492_s7 = inlined_call_operand.vmem [shape: f32[8,1], index: 7, kind: output, shape index: {}]  }
   0x1   :  { %14 = vsyncpa [#allocation6], 0  ;;  %s414_s24 = smov [#allocation5]  }
   0x2   :  { %s30_s25 = sshll.u32 %s414_s24, 4  ;;  %s31_s25 = int_to_ptr.vmem [resolvable:$true] %s30_s25 }
   0x3   :  { %s358_s26 = scalar_lea.vmem %s31_s25, 256  ;;  %p363_p1 = scmp.lt.s32.totalorder %s31_s25, %s31_s25 }
   0x4   :  { %p359_p0 = scmp.ne.s32.totalorder %s31_s25, %s358_s26  ;;  %p364_p2 = scmp.lt.s32.totalorder %s358_s26, %s358_s26 }
   0x6   :  { %p365_p3 = por %p364_p2, %p363_p1 }
   0x8   :  { %p366_p4 = pnand %p365_p3, %p359_p0 }
   0xa   :  { %369 = shalt.err (!%p366_p4)
}
   0xb   :  { %s415_s27 = smov 128   ;;  %s416_s28 = smov 8  }
   0xc   :  { %36 = dma.hbm_to_vmem [thread:$0]  %s486_s1, 256, %s31_s25, [#allocation6], %s415_s27, %s415_s27, %s416_s28  }
   0xd   :  { %s417_s8 = smov [#allocation3]   ;;  %s418_s10 = smov [#allocation7]  }
   0xe   :  { %s21_s9 = sshll.u32 %s417_s8, 4  ;;  %s44_s11 = sshll.u32 %s418_s10, 4  ;;  %s22_s9 = int_to_ptr.vmem [resolvable:$true] %s21_s9  ;;  %s45_s11 = int_to_ptr.vmem [resolvable:$true] %s44_s11 }
   0xf   :  { %s378_s12 = scalar_lea.vmem %s22_s9, 128  ;;  %p383_p6 = scmp.lt.s32.totalorder %s22_s9, %s22_s9 }
  0x10   :  { %p379_p5 = scmp.ne.s32.totalorder %s22_s9, %s378_s12  ;;  %p384_p7 = scmp.lt.s32.totalorder %s378_s12, %s378_s12 }
  0x12   :  { %p385_p8 = por %p384_p7, %p383_p6 }
  0x14   :  { %p386_p9 = pnand %p385_p8, %p379_p5 }
  0x16   :  { %389 = shalt.err (!%p386_p9)
}
  0x17   :  { %24 = dma.hbm_to_vmem [thread:$0]  %s485_s0, 128, %s22_s9, [#allocation4]  }
  0x18   :  { %s398_s15 = scalar_lea.vmem %s45_s11, 2048  ;;  %p403_p11 = scmp.lt.s32.totalorder %s45_s11, %s45_s11 }
  0x19   :  { %p399_p10 = scmp.ne.s32.totalorder %s45_s11, %s398_s15  ;;  %p404_p12 = scmp.lt.s32.totalorder %s398_s15, %s398_s15 }
  0x1b   :  { %p405_p13 = por %p404_p12, %p403_p11 }
  0x1d   :  { %p406_p0 = pnand %p405_p13, %p399_p10 }
  0x1f   :  { %409 = shalt.err (!%p406_p0)
}
  0x20   :  { %50 = dma.hbm_to_vmem [thread:$0]  %s488_s3, 2048, %s45_s11, [#allocation6], %s415_s27, %s415_s27, %s416_s28  }
  0x21   :  { %410 = dma.done.wait [#allocation4], 128  }
  0x22   :  { %411 = vsyncadd [#allocation4], 4294967168 }
  0x23   :  { %412 = dma.done.wait [#allocation6], 2304  }
  0x24   :  { %413 = vsyncadd [#allocation6], 4294964992  ;;  %v419_v0 = vmov 0.0   ;;  %vm420_vm0 = vmmov 0   ;;  %v68_v1 = vld [vmem:[#allocation5 + $0x8] sm:$0xff]  ;;  %v67_v2 = vld [vmem:[#allocation5] sm:$0xff]  ;;  %v256_v32 = vstv %s491_s6 }
  0x25   :  { %297 = vmatprep.subr.mxu0 %v419_v0  ;;  %301 = vmatprep.mubr.msk.f32.mxu0 %vm420_vm0, %v419_v0  ;;  %v66_v3 = vld [vmem:[#allocation3] sm:$0xff]  ;;  %vm76_vm1 = vcmask 130048   ;;  %v166_v4 = vld [vmem:[#allocation7 + $0x78] sm:$0xff]  ;;  %v165_v5 = vld [vmem:[#allocation7 + $0x70] sm:$0xff]  ;;  %vm264_vm2 = vcmask 7168  }
  0x26   :  { %304 = vmatprep.subr.mxu1 %v419_v0  ;;  %336 = vmatprep.mubr.msk.f32.mxu1 %vm420_vm0, %v419_v0  ;;  %v164_v6 = vld [vmem:[#allocation7 + $0x68] sm:$0xff]  ;;  %v163_v7 = vld [vmem:[#allocation7 + $0x60] sm:$0xff]  ;;  %v162_v8 = vld [vmem:[#allocation7 + $0x58] sm:$0xff] }
  0x27   :  { %298 = vmatpush3.msra.mxu0 %v68_v1  ;;  %305 = vmatpush3.msra.mxu1 %v166_v4  ;;  %v161_v9 = vld [vmem:[#allocation7 + $0x50] sm:$0xff]  ;;  %v160_v10 = vld [vmem:[#allocation7 + $0x48] sm:$0xff]  ;;  %v159_v11 = vld [vmem:[#allocation7 + $0x40] sm:$0xff] }
  0x28   :  { %299 = vmatprep.subr.mxu0 %v419_v0  ;;  %306 = vmatprep.subr.mxu1 %v419_v0  ;;  %v158_v12 = vld [vmem:[#allocation7 + $0x38] sm:$0xff]  ;;  %v157_v13 = vld [vmem:[#allocation7 + $0x30] sm:$0xff]  ;;  %v156_v14 = vld [vmem:[#allocation7 + $0x28] sm:$0xff] }
  0x29   :  { %300 = vmatpush3.msra.mxu0 %v67_v2  ;;  %307 = vmatpush3.msra.mxu1 %v165_v5  ;;  %v155_v15 = vld [vmem:[#allocation7 + $0x20] sm:$0xff]  ;;  %v154_v16 = vld [vmem:[#allocation7 + $0x18] sm:$0xff]  ;;  %v153_v17 = vld [vmem:[#allocation7 + $0x10] sm:$0xff] }
  0x2a   :  { %302 = vmatmul.mubr.msk.f32.vlgmr.msra.gmra.mxu0 %vm76_vm1, %v66_v3  ;;  %308 = vmatprep.subr.mxu1 %v419_v0  ;;  %v152_v18 = vld [vmem:[#allocation7 + $0x8] sm:$0xff]  ;;  %v151_v19 = vld [vmem:[#allocation7] sm:$0xff] }
  0x2b   :  { %309 = vmatpush3.msra.mxu1 %v164_v6  ;;  %v272_v20 = vld [vmem:[%s487_s2] ss:$0 sm:$0xff] }
  0x2c   :  { %310 = vmatprep.subr.mxu1 %v419_v0  ;;  %v274_v25 = vld [vmem:[%s489_s4] ss:$0 sm:$0xff] }
  0x2d   :  { %311 = vmatpush3.msra.mxu1 %v163_v7  ;;  %v275_v29 = vld [vmem:[%s490_s5] ss:$0 sm:$0xff] }
  0x2e   :  { %312 = vmatprep.subr.mxu1 %v419_v0 }
  0x2f   :  { %313 = vmatpush3.msra.mxu1 %v162_v8 }
  0x30   :  { %314 = vmatprep.subr.mxu1 %v419_v0 }
  0x31   :  { %315 = vmatpush3.msra.mxu1 %v161_v9 }
  0x32   :  { %316 = vmatprep.subr.mxu1 %v419_v0 }
  0x33   :  { %317 = vmatpush3.msra.mxu1 %v160_v10 }
  0x34   :  { %318 = vmatprep.subr.mxu1 %v419_v0 }
  0x35   :  { %319 = vmatpush3.msra.mxu1 %v159_v11 }
  0x36   :  { %320 = vmatprep.subr.mxu1 %v419_v0 }
  0x37   :  { %321 = vmatpush3.msra.mxu1 %v158_v12 }
  0x38   :  { %322 = vmatprep.subr.mxu1 %v419_v0 }
  0x39   :  { %323 = vmatpush3.msra.mxu1 %v157_v13 }
  0x3a   :  { %324 = vmatprep.subr.mxu1 %v419_v0 }
  0x3b   :  { %325 = vmatpush3.msra.mxu1 %v156_v14 }
  0x3c   :  { %326 = vmatprep.subr.mxu1 %v419_v0 }
  0x3d   :  { %327 = vmatpush3.msra.mxu1 %v155_v15 }
  0x3e   :  { %328 = vmatprep.subr.mxu1 %v419_v0 }
  0x3f   :  { %329 = vmatpush3.msra.mxu1 %v154_v16 }
  0x40   :  { %330 = vmatprep.subr.mxu1 %v419_v0 }
  0x41   :  { %331 = vmatpush3.msra.mxu1 %v153_v17 }
  0x42   :  { %332 = vmatprep.subr.mxu1 %v419_v0 }
  0x43   :  { %333 = vmatpush3.msra.mxu1 %v152_v18 }
  0x44   :  { %334 = vmatprep.subr.mxu1 %v419_v0 }
  0x45   :  { %335 = vmatpush3.msra.mxu1 %v151_v19 }
  0xea   :  { %v146_v21 = vpop.f32.mrf.mxu0 }
  0xeb   :  { %v147_v22 = vadd.f32 %v272_v20, %v146_v21 }
  0xec   :  { %v303_v23 = vpop.f32.mrf.mxu0 }
  0xed   :  { %v150_v24 = vmax.f32 %v147_v22, 0.0 }
  0xef   :  { %337 = vmatmul.mubr.f32.vlgmr.msra.gmra.mxu1 %v150_v24 }
 0x1af   :  { %v240_v26 = vpop.f32.mrf.mxu1 }
 0x1b0   :  { %v241_v27 = vadd.f32 %v274_v25, %v240_v26 }
 0x1b1   :  { %v338_v28 = vpop.f32.mrf.mxu1 }
 0x1b2   :  { %v244_v30 = vmax.f32 %v241_v27, 0.0 }
 0x1b4   :  { %v252_v31 = vmul.f32 %v275_v29, %v244_v30 }
 0x1b6   :  { %253 = vadd.xlane.f32.xlu0 %v252_v31 }
 0x23f   :  { %v254_v33 = vpop.xlane.xlu0 %253 }
 0x240   :  { %v257_v34 = vadd.f32 %v256_v32, %v254_v33 }
 0x242   :  { %v276_v35 = vmul.f32 -1.442695, %v257_v34 }
 0x244   :  { %346 = vpow2.f32 %v276_v35 }
 0x251   :  { %v347_v36 = vpop.eup %346 }
 0x252   :  { %v261_v37 = vadd.f32 1.0, %v347_v36 }
 0x254   :  { %348 = vrcp.f32 %v261_v37 }
 0x261   :  { %v349_v38 = vpop.eup %348 }
 0x262   :  { %265 = vst.msk [vmem:[%s492_s7] sm:$0xff] %vm264_vm2, %v349_v38 }
 0x263   :  { %270 = vsyncpa [#allocation4], 1 }
 0x264   :  { %271 = vsyncpa [#allocation6], 1 }

</bundles_post_ra>
